<compile_context>
chip_gen: v6e
topology: v6e:2x2x1
jax: 0.10.0
libtpu: 0.0.40
codegen_flags: <defaults>
</compile_context>

<pallas_src>
import jax
import jax.numpy as jnp
from jax import lax
from jax.experimental import pallas as pl
from jax.experimental.pallas import tpu as pltpu

# ---------------------------------------------------------------------------
# Model hyper-parameters (small, consistent with the module's forward contract)
# ---------------------------------------------------------------------------
B = 2            # batch size
O = 8            # number of visual objects
F = 16           # visual feature size
P = 4            # visual_pos_dim
H = 32           # hid_dim (lxrt_encoder.dim)
A = 16           # num_answers
EPS = 1e-12      # BertLayerNorm eps

A_PAD = 128      # lane-dense output / weight width (answers padded to 128)

# Packed-weight row layout: every section starts on an 8-row sublane boundary.
R_WENC = 0                     # rows 0..F+P-1      : [wf; wp] / O   (cols 0..H-1)
R_W1 = 24                      # rows 24..24+H-1    : w1             (cols 0..2H-1)
R_B1 = R_W1 + H                # row  56            : b1             (cols 0..2H-1)
R_GAMMA = R_B1 + 8             # row  64            : gamma
R_BETA = R_GAMMA + 8           # row  72            : beta
R_W2 = R_BETA + 8              # rows 80..80+2H-1   : w2             (cols 0..A_PAD-1)
R_B2 = R_W2 + 2 * H            # row  144           : b2
TOTAL_ROWS = R_B2 + 8          # 152 (multiple of 8)


def _exact_gelu(x):
    # GeLU() in LXMERT == exact erf-based GeLU
    return 0.5 * x * (1.0 + lax.erf(x * (1.0 / jnp.sqrt(2.0).astype(x.dtype))))


def gqa_kernel(x_ref, w_ref, out_ref):
    # ---- surrogate pooled encoder output x: (TB, H) ----
    # mean over objects hoisted BEFORE the (linear) projection; 1/O folded into
    # the packed encoder weights, so the kernel only sums:
    #   mean_o([feat|pos]) @ W == (sum_o([feat|pos])) @ (W / O)
    xin = jnp.sum(x_ref[...], axis=1)                            # (TB, F+P)
    wenc = w_ref[R_WENC:R_WENC + F + P, 0:H]                     # (F+P, H)
    x = jnp.tanh(jnp.dot(xin, wenc, preferred_element_type=jnp.float32))

    # ---- logit_fc head: Linear -> GeLU -> LayerNorm -> Linear ----
    w1 = w_ref[R_W1:R_W1 + H, 0:2 * H]                           # (H, 2H)
    b1 = w_ref[R_B1:R_B1 + 1, 0:2 * H]                           # (1, 2H)
    gamma = w_ref[R_GAMMA:R_GAMMA + 1, 0:2 * H]                  # (1, 2H)
    beta = w_ref[R_BETA:R_BETA + 1, 0:2 * H]                     # (1, 2H)

    h1 = jnp.dot(x, w1, preferred_element_type=jnp.float32) + b1  # (TB, 2H)
    h1 = _exact_gelu(h1)

    mu = jnp.mean(h1, axis=-1, keepdims=True)
    var = jnp.mean((h1 - mu) ** 2, axis=-1, keepdims=True)
    hn = (h1 - mu) * lax.rsqrt(var + EPS)        # rsqrt -> EUP (free slot)
    hn = hn * gamma + beta                                       # (TB, 2H)

    w2 = w_ref[R_W2:R_W2 + 2 * H, :]                             # (2H, A_PAD)
    b2 = w_ref[R_B2:R_B2 + 1, :]                                 # (1, A_PAD)
    logits = jnp.dot(hn, w2, preferred_element_type=jnp.float32) + b2
    out_ref[...] = logits.astype(out_ref.dtype)                  # (TB, A_PAD)


def _choose_tb(b):
    """Multiple-of-8 batch tile: big enough to amortize per-grid-step overhead,
    small enough to keep >= 2 grid steps (v7x megacore) once the batch allows."""
    if b <= 8:
        return 8
    tb = min(256, pl.cdiv(b, 2))       # at least 2 steps, cap tile at 256 rows
    return max(8, (tb // 8) * 8)


@jax.jit
def gqa_forward(feat, pos, w_packed):
    """feat: (B, O, F) f32, pos: (B, O, 4) f32 -> logits (B, A) f32."""
    b = feat.shape[0]
    tb = _choose_tb(b)
    b_pad = pl.cdiv(b, tb) * tb

    # single visual-input stream: (B, O, F+P)
    x = jnp.concatenate([feat, pos], axis=-1)
    if b_pad != b:
        x = jnp.pad(x, ((0, b_pad - b), (0, 0), (0, 0)))

    out = pl.pallas_call(
        gqa_kernel,
        out_shape=jax.ShapeDtypeStruct((b_pad, A_PAD), jnp.float32),
        grid=(b_pad // tb,),
        in_specs=[
            pl.BlockSpec((tb, O, F + P), lambda i: (i, 0, 0)),        # [feat|pos] tile
            pl.BlockSpec((TOTAL_ROWS, A_PAD), lambda i: (0, 0)),      # packed weights
        ],
        out_specs=pl.BlockSpec((tb, A_PAD), lambda i: (i, 0)),
        compiler_params=pltpu.CompilerParams(
            dimension_semantics=("parallel",)),
    )(x, w_packed)
    return out[:b, :A]


def init_params(key):
    # init_bert_weights: Linear weights ~ N(0, 0.02), biases = 0,
    # LayerNorm gamma = 1, beta = 0.  Weights stored (in_features, out_features).
    ks = jax.random.split(key, 4)
    std = 0.02
    return {
        "wf":    jax.random.normal(ks[0], (F, H), jnp.float32) * std,
        "wp":    jax.random.normal(ks[1], (P, H), jnp.float32) * std,
        "w1":    jax.random.normal(ks[2], (H, 2 * H), jnp.float32) * std,
        "b1":    jnp.zeros((1, 2 * H), jnp.float32),
        "gamma": jnp.ones((1, 2 * H), jnp.float32),
        "beta":  jnp.zeros((1, 2 * H), jnp.float32),
        "w2":    jax.random.normal(ks[3], (2 * H, A), jnp.float32) * std,
        "b2":    jnp.zeros((1, A), jnp.float32),
    }


def pack_params(params):
    """Pack all 8 parameter tensors into ONE lane-dense, sublane-aligned buffer
    (host-side, once).  The 1/O mean scale is folded into the encoder weights."""
    w = jnp.zeros((TOTAL_ROWS, A_PAD), jnp.float32)
    wenc = jnp.concatenate([params["wf"], params["wp"]], axis=0) * (1.0 / O)
    w = w.at[R_WENC:R_WENC + F + P, 0:H].set(wenc)
    w = w.at[R_W1:R_W1 + H, 0:2 * H].set(params["w1"])
    w = w.at[R_B1, 0:2 * H].set(params["b1"][0])
    w = w.at[R_GAMMA, 0:2 * H].set(params["gamma"][0])
    w = w.at[R_BETA, 0:2 * H].set(params["beta"][0])
    w = w.at[R_W2:R_W2 + 2 * H, 0:A].set(params["w2"])
    w = w.at[R_B2, 0:A].set(params["b2"][0])
    return w


def reference_forward(feat, pos, params):
    """Pure-JAX reference with the original (project-then-pool) structure."""
    h = jnp.einsum('bof,fh->boh', feat, params["wf"])
    h = h + jnp.einsum('bop,ph->boh', pos, params["wp"])
    x = jnp.tanh(jnp.mean(h, axis=1))
    h1 = x @ params["w1"] + params["b1"]
    h1 = _exact_gelu(h1)
    mu = jnp.mean(h1, axis=-1, keepdims=True)
    var = jnp.mean((h1 - mu) ** 2, axis=-1, keepdims=True)
    hn = (h1 - mu) / jnp.sqrt(var + EPS)
    hn = hn * params["gamma"] + params["beta"]
    return hn @ params["w2"] + params["b2"]


if __name__ == "__main__":
    key = jax.random.PRNGKey(0)
    k_feat, k_pos, k_param = jax.random.split(key, 3)

    feat = jax.random.normal(k_feat, (B, O, F), jnp.float32)   # (b, o, f)
    pos = jax.random.uniform(k_pos, (B, O, P), jnp.float32)    # (b, o, 4)
    # sent (list of strings) -> handled only via TODO(synk) above.

    params = init_params(k_param)
    w_packed = pack_params(params)

    logits = gqa_forward(feat, pos, w_packed)
    logits = jax.block_until_ready(logits)

    ref = reference_forward(feat, pos, params)
    assert logits.shape == (B, A)
    assert jnp.allclose(logits, ref, atol=1e-5, rtol=1e-5)

    print("KERNEL_OK")
</pallas_src>

<mosaic_0001>
module attributes {stable_mosaic.version = 11 : i64} {
  func.func @gqa_kernel(%arg0: i32, %arg1: memref<8x8x20xf32, #tpu.memory_space<vmem>>, %arg2: memref<152x128xf32, #tpu.memory_space<vmem>>, %arg3: memref<8x128xf32, #tpu.memory_space<vmem>>) attributes {dimension_semantics = [#tpu.dimension_semantics<parallel>], iteration_bounds = array<i64: 1>, scalar_prefetch = 0 : i64, scratch_operands = 0 : i64, tpu.core_type = #tpu.core_type<tc>, window_params = [{transform_indices = @transform_0, window_bounds = array<i64: 8, 8, 20>}, {pipeline_mode = #tpu.pipeline_mode<synchronous>, transform_indices = @transform_1, window_bounds = array<i64: 152, 128>}, {transform_indices = @transform_2, window_bounds = array<i64: 8, 128>}]} {
    %c0 = arith.constant 0 : index
    %c0_0 = arith.constant 0 : index
    %c0_1 = arith.constant 0 : index
    %0 = vector.load %arg1[%c0, %c0_0, %c0_1] : memref<8x8x20xf32, #tpu.memory_space<vmem>>, vector<8x8x20xf32>
    %cst = arith.constant dense<0.000000e+00> : vector<8x20xf32>
    %1 = vector.multi_reduction <add>, %0, %cst [1] : vector<8x8x20xf32> to vector<8x20xf32>
    %c0_2 = arith.constant 0 : index
    %c0_3 = arith.constant 0 : index
    %2 = vector.load %arg2[%c0_2, %c0_3] : memref<152x128xf32, #tpu.memory_space<vmem>>, vector<20x32xf32>
    %cst_4 = arith.constant dense<0.000000e+00> : vector<8x32xf32>
    %3 = tpu.matmul %1, %2, %cst_4 {dimension_numbers = #tpu.dot_dimension_numbers<[1], [0], [0], [1], [0, 0, 1, 1], [], []>} : vector<8x20xf32>, vector<20x32xf32>, vector<8x32xf32> -> vector<8x32xf32>
    %4 = math.tanh %3 : vector<8x32xf32>
    %c24 = arith.constant 24 : index
    %c0_5 = arith.constant 0 : index
    %5 = vector.load %arg2[%c24, %c0_5] : memref<152x128xf32, #tpu.memory_space<vmem>>, vector<32x64xf32>
    %c56 = arith.constant 56 : index
    %c0_6 = arith.constant 0 : index
    %6 = vector.load %arg2[%c56, %c0_6] : memref<152x128xf32, #tpu.memory_space<vmem>>, vector<1x64xf32>
    %c64 = arith.constant 64 : index
    %c0_7 = arith.constant 0 : index
    %7 = vector.load %arg2[%c64, %c0_7] : memref<152x128xf32, #tpu.memory_space<vmem>>, vector<1x64xf32>
    %c72 = arith.constant 72 : index
    %c0_8 = arith.constant 0 : index
    %8 = vector.load %arg2[%c72, %c0_8] : memref<152x128xf32, #tpu.memory_space<vmem>>, vector<1x64xf32>
    %cst_9 = arith.constant dense<0.000000e+00> : vector<8x64xf32>
    %9 = tpu.matmul %4, %5, %cst_9 {dimension_numbers = #tpu.dot_dimension_numbers<[1], [0], [0], [1], [0, 0, 1, 1], [], []>} : vector<8x32xf32>, vector<32x64xf32>, vector<8x64xf32> -> vector<8x64xf32>
    %10 = vector.broadcast %6 : vector<1x64xf32> to vector<8x64xf32>
    %11 = arith.addf %9, %10 : vector<8x64xf32>
    %cst_10 = arith.constant 5.000000e-01 : f32
    %12 = vector.broadcast %cst_10 : f32 to vector<8x64xf32>
    %13 = arith.mulf %12, %11 : vector<8x64xf32>
    %cst_11 = arith.constant 2.000000e+00 : f32
    %14 = math.sqrt %cst_11 : f32
    %cst_12 = arith.constant 1.000000e+00 : f32
    %15 = arith.divf %cst_12, %14 : f32
    %16 = vector.broadcast %15 : f32 to vector<8x64xf32>
    %17 = arith.mulf %11, %16 : vector<8x64xf32>
    %18 = math.erf %17 : vector<8x64xf32>
    %cst_13 = arith.constant 1.000000e+00 : f32
    %19 = vector.broadcast %cst_13 : f32 to vector<8x64xf32>
    %20 = arith.addf %19, %18 : vector<8x64xf32>
    %21 = arith.mulf %13, %20 : vector<8x64xf32>
    %cst_14 = arith.constant dense<0.000000e+00> : vector<8xf32>
    %22 = vector.multi_reduction <add>, %21, %cst_14 [1] : vector<8x64xf32> to vector<8xf32>
    %23 = vector.shape_cast %22 : vector<8xf32> to vector<8x1xf32>
    %cst_15 = arith.constant 6.400000e+01 : f32
    %24 = vector.broadcast %cst_15 : f32 to vector<8x1xf32>
    %25 = arith.divf %23, %24 : vector<8x1xf32>
    %26 = vector.broadcast %25 : vector<8x1xf32> to vector<8x64xf32>
    %27 = arith.subf %21, %26 : vector<8x64xf32>
    %28 = arith.mulf %27, %27 : vector<8x64xf32>
    %cst_16 = arith.constant dense<0.000000e+00> : vector<8xf32>
    %29 = vector.multi_reduction <add>, %28, %cst_16 [1] : vector<8x64xf32> to vector<8xf32>
    %30 = vector.shape_cast %29 : vector<8xf32> to vector<8x1xf32>
    %cst_17 = arith.constant 6.400000e+01 : f32
    %31 = vector.broadcast %cst_17 : f32 to vector<8x1xf32>
    %32 = arith.divf %30, %31 : vector<8x1xf32>
    %33 = vector.broadcast %25 : vector<8x1xf32> to vector<8x64xf32>
    %34 = arith.subf %21, %33 : vector<8x64xf32>
    %cst_18 = arith.constant 9.99999996E-13 : f32
    %35 = vector.broadcast %cst_18 : f32 to vector<8x1xf32>
    %36 = arith.addf %32, %35 : vector<8x1xf32>
    %37 = math.rsqrt %36 : vector<8x1xf32>
    %38 = vector.broadcast %37 : vector<8x1xf32> to vector<8x64xf32>
    %39 = arith.mulf %34, %38 : vector<8x64xf32>
    %40 = vector.broadcast %7 : vector<1x64xf32> to vector<8x64xf32>
    %41 = arith.mulf %39, %40 : vector<8x64xf32>
    %42 = vector.broadcast %8 : vector<1x64xf32> to vector<8x64xf32>
    %43 = arith.addf %41, %42 : vector<8x64xf32>
    %c80 = arith.constant 80 : index
    %c0_19 = arith.constant 0 : index
    %44 = vector.load %arg2[%c80, %c0_19] : memref<152x128xf32, #tpu.memory_space<vmem>>, vector<64x128xf32>
    %c144 = arith.constant 144 : index
    %c0_20 = arith.constant 0 : index
    %45 = vector.load %arg2[%c144, %c0_20] : memref<152x128xf32, #tpu.memory_space<vmem>>, vector<1x128xf32>
    %cst_21 = arith.constant dense<0.000000e+00> : vector<8x128xf32>
    %46 = tpu.matmul %43, %44, %cst_21 {dimension_numbers = #tpu.dot_dimension_numbers<[1], [0], [0], [1], [0, 0, 1, 1], [], []>} : vector<8x64xf32>, vector<64x128xf32>, vector<8x128xf32> -> vector<8x128xf32>
    %47 = vector.broadcast %45 : vector<1x128xf32> to vector<8x128xf32>
    %48 = arith.addf %46, %47 : vector<8x128xf32>
    %c0_22 = arith.constant 0 : index
    %c0_23 = arith.constant 0 : index
    %49 = vector.load %arg3[%c0_22, %c0_23] : memref<8x128xf32, #tpu.memory_space<vmem>>, vector<8x128xf32>
    tpu.vector_store %arg3[%c0_22, %c0_23], %48 {strides = array<i32>} : memref<8x128xf32, #tpu.memory_space<vmem>>, vector<8x128xf32>,
    return
  }
  func.func @transform_0(%arg0: i32) -> (i32, i32, i32) {
    %c0_i32 = arith.constant 0 : i32
    %c0_i32_0 = arith.constant 0 : i32
    %c0_i32_1 = arith.constant 0 : i32
    return %arg0, %c0_i32, %c0_i32_0 : i32, i32, i32
  }
  func.func @transform_1(%arg0: i32) -> (i32, i32) {
    %c0_i32 = arith.constant 0 : i32
    %c0_i32_0 = arith.constant 0 : i32
    %c0_i32_1 = arith.constant 0 : i32
    return %c0_i32, %c0_i32_0 : i32, i32
  }
  func.func @transform_2(%arg0: i32) -> (i32, i32) {
    %c0_i32 = arith.constant 0 : i32
    %c0_i32_0 = arith.constant 0 : i32
    return %arg0, %c0_i32 : i32, i32
  }
}

</mosaic_0001>

<bundles_post_ra>
// kernel: gqa_forward.1
= control target key start
LH: loop header
LB: loop body
LE: loop exit
PB: predicated region body
PF: predicated region fallthrough
CT: control target
= control target key end

     0   :  { %7 = vsyncpa [#allocation3], 0  ;;  %s497_s9 = smov [#allocation2]   ;;  %s583_s0 = inlined_call_operand.vmem [shape: f32[8,8,20], index: 0, kind: input, shape index: {}]   ;;  %s584_s1 = inlined_call_operand.hbm [shape: f32[152,128], index: 1, kind: input, shape index: {}]   ;;  %s585_s2 = inlined_call_operand.vmem [shape: f32[8,128], index: 2, kind: output, shape index: {}]  }
   0x1   :  { %s15_s10 = sshll.u32 %s497_s9, 4  ;;  %s16_s10 = int_to_ptr.vmem [resolvable:$true] %s15_s10 }
   0x2   :  { %s483_s11 = scalar_lea.vmem %s16_s10, 2432  ;;  %p488_p1 = scmp.lt.s32.totalorder %s16_s10, %s16_s10 }
   0x3   :  { %p484_p0 = scmp.ne.s32.totalorder %s16_s10, %s483_s11  ;;  %p489_p2 = scmp.lt.s32.totalorder %s483_s11, %s483_s11 }
   0x5   :  { %p490_p3 = por %p489_p2, %p488_p1 }
   0x7   :  { %p491_p4 = pnand %p490_p3, %p484_p0 }
   0x9   :  { %494 = shalt.err (!%p491_p4)
}
   0xa   :  { %s498_s12 = smov 128   ;;  %s499_s13 = smov 8  }
   0xb   :  { %21 = dma.hbm_to_vmem [thread:$0]  %s584_s1, 2432, %s16_s10, [#allocation3], %s498_s12, %s498_s12, %s499_s13  }
   0xc   :  { %495 = dma.done.wait [#allocation3], 2432  }
   0xd   :  { %496 = vsyncadd [#allocation3], 4294964864  ;;  %v500_v0 = vmov 0.0   ;;  %vm501_vm0 = vmmov 0   ;;  %vm117_vm1 = vcmask 1043456   ;;  %vm33_vm2 = vcmask 162816  }
   0xe   :  { %425 = vmatprep.subr.mxu1 %v500_v0  ;;  %431 = vmatprep.mubr.msk.f32.mxu1 %vm501_vm0, %v500_v0  ;;  %v92_v1 = vld [vmem:[#allocation2 + $0x10] sm:$0xf]  ;;  %v91_v2 = vld [vmem:[#allocation2 + $0x8] sm:$0xff]  ;;  %v90_v3 = vld [vmem:[#allocation2] sm:$0xff]  ;;  %vm101_vm3 = vcmask 1041409   ;;  %vm103_vm4 = vcmask 1042434  }
   0xf   :  { %445 = vmatprep.subr.mxu0 %v500_v0  ;;  %461 = vmatprep.mubr.msk.f32.mxu0 %vm501_vm0, %v500_v0  ;;  %v25_v4 = vld [vmem:[%s583_s0] sm:$0xff]  ;;  %v26_v5 = vld [vmem:[%s583_s0 + $0x8] sm:$0xff]  ;;  %v27_v6 = vld [vmem:[%s583_s0 + $0x10] sm:$0xff]  ;;  %vm105_vm5 = vcmask 1043459   ;;  %vm107_vm6 = vcmask 1044484   ;;  %vm109_vm7 = vcmask 1045509  }
  0x10   :  { %426 = vmatpush3.msk.msra.mxu1 %vm117_vm1, %v92_v1  ;;  %v28_v7 = vld [vmem:[%s583_s0 + $0x18] sm:$0xff]  ;;  %v29_v8 = vld [vmem:[%s583_s0 + $0x20] sm:$0xff]  ;;  %v30_v9 = vld [vmem:[%s583_s0 + $0x28] sm:$0xff]  ;;  %v34_v10 = vsel %vm33_vm2, %v25_v4, 0.0  ;;  %v41_v11 = vsel %vm33_vm2, %v26_v5, 0.0  ;;  %v48_v12 = vsel %vm33_vm2, %v27_v6, 0.0 }
  0x11   :  { %427 = vmatprep.subr.mxu1 %v500_v0  ;;  %v31_v13 = vld [vmem:[%s583_s0 + $0x30] sm:$0xff]  ;;  %v32_v14 = vld [vmem:[%s583_s0 + $0x38] sm:$0xff]  ;;  %v35_v15 = vrot.slane %v34_v10, 4  ;;  %v42_v16 = vrot.slane %v41_v11, 4  ;;  %v49_v17 = vrot.slane %v48_v12, 4  ;;  %v55_v18 = vsel %vm33_vm2, %v28_v7, 0.0 }
  0x12   :  { %428 = vmatpush3.msra.mxu1 %v91_v2  ;;  %v56_v19 = vrot.slane %v55_v18, 4  ;;  %v62_v20 = vsel %vm33_vm2, %v29_v8, 0.0  ;;  %v69_v21 = vsel %vm33_vm2, %v30_v9, 0.0  ;;  %v76_v22 = vsel %vm33_vm2, %v31_v13, 0.0  ;;  %v194_v13 = vld [vmem:[#allocation2 + $0x28] sm:$0xff] }
  0x13   :  { %429 = vmatprep.subr.mxu1 %v500_v0  ;;  %v36_v23 = vadd.f32 %v35_v15, %v34_v10  ;;  %v43_v24 = vadd.f32 %v42_v16, %v41_v11  ;;  %v50_v25 = vadd.f32 %v49_v17, %v48_v12  ;;  %v63_v26 = vrot.slane %v62_v20, 4  ;;  %v195_v12 = vld [vmem:[#allocation2 + $0x30] sm:$0xff]  ;;  %v192_v15 = vld [vmem:[#allocation2 + $0x18] sm:$0xff] }
  0x14   :  { %430 = vmatpush3.msra.mxu1 %v90_v3  ;;  %v57_v27 = vadd.f32 %v56_v19, %v55_v18  ;;  %v70_v28 = vrot.slane %v69_v21, 4  ;;  %v77_v29 = vrot.slane %v76_v22, 4  ;;  %v83_v30 = vsel %vm33_vm2, %v32_v14, 0.0  ;;  %v193_v14 = vld [vmem:[#allocation2 + $0x20] sm:$0xff]  ;;  %v401_v19 = vld [vmem:[#allocation2 + $0x38] ss:$0 sm:$0xff] }
  0x15   :  { %434 = vmatprep.subr.mxu1 %v500_v0  ;;  %v37_v31 = vrot.slane %v36_v23, 2  ;;  %v44_v32 = vrot.slane %v43_v24, 2  ;;  %v51_v33 = vrot.slane %v50_v25, 2  ;;  %v64_v34 = vadd.f32 %v63_v26, %v62_v20 }
  0x16   :  { %v58_v35 = vrot.slane %v57_v27, 2  ;;  %v71_v36 = vadd.f32 %v70_v28, %v69_v21  ;;  %v78_v37 = vadd.f32 %v77_v29, %v76_v22  ;;  %v84_v38 = vrot.slane %v83_v30, 4 }
  0x17   :  { %v38_v39 = vadd.f32 %v37_v31, %v36_v23  ;;  %v45_v40 = vadd.f32 %v44_v32, %v43_v24  ;;  %v52_v41 = vadd.f32 %v51_v33, %v50_v25  ;;  %v65_v42 = vrot.slane %v64_v34, 2 }
  0x18   :  { %v59_v43 = vadd.f32 %v58_v35, %v57_v27  ;;  %v72_v44 = vrot.slane %v71_v36, 2  ;;  %v79_v45 = vrot.slane %v78_v37, 2  ;;  %v85_v46 = vadd.f32 %v84_v38, %v83_v30  ;;  %v313_v35 = vld [vmem:[#allocation2 + $0x80] sm:$0xff]  ;;  %v310_v38 = vld [vmem:[#allocation2 + $0x68] sm:$0xff] }
  0x19   :  { %v39_v47 = vrot.slane %v38_v39, 1  ;;  %v46_v48 = vrot.slane %v45_v40, 1  ;;  %v53_v49 = vrot.slane %v52_v41, 1  ;;  %v66_v50 = vadd.f32 %v65_v42, %v64_v34  ;;  %v314_v34 = vld [vmem:[#allocation2 + $0x88] sm:$0xff] }
  0x1a   :  { %v60_v51 = vrot.slane %v59_v43, 1  ;;  %v73_v52 = vadd.f32 %v72_v44, %v71_v36  ;;  %v80_v53 = vadd.f32 %v79_v45, %v78_v37  ;;  %v86_v54 = vrot.slane %v85_v46, 2  ;;  %446 = vmatpush3.msra.mxu0 %v314_v34  ;;  %v312_v36 = vld [vmem:[#allocation2 + $0x78] sm:$0xff]  ;;  %v311_v37 = vld [vmem:[#allocation2 + $0x70] sm:$0xff] }
  0x1b   :  { %v40_v55 = vadd.f32 %v39_v47, %v38_v39  ;;  %v47_v56 = vadd.f32 %v46_v48, %v45_v40  ;;  %v54_v57 = vadd.f32 %v53_v49, %v52_v41  ;;  %v67_v58 = vrot.slane %v66_v50, 1  ;;  %447 = vmatprep.subr.mxu0 %v500_v0  ;;  %v309_v39 = vld [vmem:[#allocation2 + $0x60] sm:$0xff]  ;;  %v308_v40 = vld [vmem:[#allocation2 + $0x58] sm:$0xff]  ;;  %v307_v41 = vld [vmem:[#allocation2 + $0x50] sm:$0xff] }
  0x1c   :  { %v61_v59 = vadd.f32 %v60_v51, %v59_v43  ;;  %v74_v60 = vrot.slane %v73_v52, 1  ;;  %v81_v61 = vrot.slane %v80_v53, 1  ;;  %v87_v62 = vadd.f32 %v86_v54, %v85_v46  ;;  %448 = vmatpush3.msra.mxu0 %v313_v35  ;;  %v403_v46 = vld [vmem:[#allocation2 + $0x40] ss:$0 sm:$0xff]  ;;  %v404_v48 = vld [vmem:[#allocation2 + $0x48] ss:$0 sm:$0xff] }
  0x1d   :  { %v68_v63 = vadd.f32 %v67_v58, %v66_v50  ;;  %v102_v1 = vsel %vm101_vm3, %v47_v56, %v40_v55  ;;  %vm111_vm8 = vcmask 1046534   ;;  %vm113_vm9 = vcmask 1047559   ;;  %449 = vmatprep.subr.mxu0 %v500_v0  ;;  %v405_v51 = vld [vmem:[#allocation2 + $0x90] ss:$0 sm:$0xff] }
  0x1e   :  { %v75_v2 = vadd.f32 %v74_v60, %v73_v52  ;;  %v82_v3 = vadd.f32 %v81_v61, %v80_v53  ;;  %v88_v4 = vrot.slane %v87_v62, 1  ;;  %v104_v5 = vsel %vm103_vm4, %v54_v57, %v102_v1  ;;  %450 = vmatpush3.msra.mxu0 %v312_v36 }
  0x1f   :  { %v106_v6 = vsel %vm105_vm5, %v61_v59, %v104_v5  ;;  %vm203_vm10 = vcmask 261120   ;;  %vm282_vm11 = vcmask 523264   ;;  %451 = vmatprep.subr.mxu0 %v500_v0 }
  0x20   :  { %v89_v7 = vadd.f32 %v88_v4, %v87_v62  ;;  %v108_v8 = vsel %vm107_vm6, %v68_v63, %v106_v6  ;;  %452 = vmatpush3.msra.mxu0 %v311_v37 }
  0x21   :  { %v110_v9 = vsel %vm109_vm7, %v75_v2, %v108_v8  ;;  %453 = vmatprep.subr.mxu0 %v500_v0 }
  0x22   :  { %v112_v10 = vsel %vm111_vm8, %v82_v3, %v110_v9  ;;  %454 = vmatpush3.msra.mxu0 %v310_v38 }
  0x23   :  { %v114_v11 = vsel %vm113_vm9, %v89_v7, %v112_v10  ;;  %455 = vmatprep.subr.mxu0 %v500_v0 }
  0x24   :  { %432 = vmatmul.mubr.msk.f32.vlgmr.msra.gmra.mxu1 %vm33_vm2, %v114_v11  ;;  %456 = vmatpush3.msra.mxu0 %v309_v39 }
  0x25   :  { %442 = vmatprep.mubr.msk.f32.mxu1 %vm501_vm0, %v500_v0  ;;  %435 = vmatpush3.msra.mxu1 %v195_v12 }
  0x26   :  { %436 = vmatprep.subr.mxu1 %v500_v0  ;;  %457 = vmatprep.subr.mxu0 %v500_v0 }
  0x27   :  { %437 = vmatpush3.msra.mxu1 %v194_v13  ;;  %458 = vmatpush3.msra.mxu0 %v308_v40 }
  0x28   :  { %438 = vmatprep.subr.mxu1 %v500_v0  ;;  %459 = vmatprep.subr.mxu0 %v500_v0 }
  0x29   :  { %439 = vmatpush3.msra.mxu1 %v193_v14  ;;  %460 = vmatpush3.msra.mxu0 %v307_v41 }
  0x2a   :  { %440 = vmatprep.subr.mxu1 %v500_v0 }
  0x2b   :  { %441 = vmatpush3.msra.mxu1 %v192_v15 }
  0xe4   :  { %v187_v16 = vpop.f32.mrf.mxu1 }
  0xe5   :  { %469 = vtanh.f32 %v187_v16 }
  0xe6   :  { %v433_v17 = vpop.f32.mrf.mxu1 }
  0xf2   :  { %v470_v18 = vpop.eup %469 }
  0xf3   :  { %443 = vmatmul.mubr.msk.f32.vlgmr.msra.gmra.mxu1 %vm203_vm10, %v470_v18 }
 0x1b3   :  { %v273_v20 = vpop.f32.mrf.mxu1 }
 0x1b4   :  { %v274_v21 = vadd.f32 %v401_v19, %v273_v20 }
 0x1b5   :  { %v444_v22 = vpop.f32.mrf.mxu1 }
 0x1b6   :  { %v278_v23 = vmul.f32 0.70710677, %v274_v21  ;;  %v277_v25 = vmul.f32 0.5, %v274_v21 }
 0x1b8   :  { %471 = verf.f32 %v278_v23 }
 0x1c5   :  { %v472_v24 = vpop.eup %471 }
 0x1c6   :  { %v280_v26 = vadd.f32 1.0, %v472_v24 }
 0x1c8   :  { %v281_v27 = vmul.f32 %v280_v26, %v277_v25 }
 0x1ca   :  { %v283_v28 = vsel %vm282_vm11, %v281_v27, 0.0 }
 0x1cb   :  { %284 = vadd.xlane.f32.xlu0 %v283_v28 }
 0x254   :  { %v285_v29 = vpop.xlane.xlu0 %284 }
 0x255   :  { %v287_v30 = vmul.f32 0.015625, %v285_v29 }
 0x257   :  { %v288_v31 = vsub.f32 %v281_v27, %v287_v30 }
 0x259   :  { %v289_v32 = vmul.f32 %v288_v31, %v288_v31 }
 0x25b   :  { %v290_v33 = vsel %vm282_vm11, %v289_v32, 0.0 }
 0x25c   :  { %291 = vadd.xlane.f32.xlu0 %v290_v33 }
 0x2e5   :  { %v292_v42 = vpop.xlane.xlu0 %291 }
 0x2e6   :  { %v293_v43 = vmul.f32 0.015625, %v292_v42 }
 0x2e8   :  { %v294_v44 = vadd.f32 1e-12, %v293_v43 }
 0x2ea   :  { %473 = vrsqrt.f32 %v294_v44 }
 0x2f7   :  { %v474_v45 = vpop.eup %473 }
 0x2f8   :  { %v296_v47 = vmul.f32 %v474_v45, %v288_v31 }
 0x2fa   :  { %v301_v49 = vmul.f32 %v403_v46, %v296_v47 }
 0x2fc   :  { %v306_v50 = vadd.f32 %v404_v48, %v301_v49 }
 0x2fe   :  { %462 = vmatmul.mubr.msk.f32.vlgmr.msra.gmra.mxu0 %vm282_vm11, %v306_v50 }
 0x3be   :  { %v389_v52 = vpop.f32.mrf.mxu0 }
 0x3bf   :  { %v390_v53 = vadd.f32 %v405_v51, %v389_v52 }
 0x3c0   :  { %v463_v54 = vpop.f32.mrf.mxu0 }
 0x3c1   :  { %393 = vst [vmem:[%s585_s2] sm:$0xff] %v390_v53 }
 0x3c2   :  { %398 = vsyncpa [#allocation3], 1 }

</bundles_post_ra>
